<compile_context>
chip_gen: v5e
topology: v5e:2x2
jax: 0.10.0
libtpu: 0.0.40
codegen_flags: <defaults>
</compile_context>

<pallas_src>
from functools import partial

import jax
import jax.numpy as jnp
from jax import lax
from jax.experimental import pallas as pl
from jax.experimental.pallas import tpu as pltpu


def _attention_kernel(attention_dims):
    A = attention_dims
    scale = 1.0 / (A ** 0.5)

    def kernel(x_ref, wqkv_ref, bqkv_ref, wo_ref, bo_ref, o_ref):
        # x_ref block: (1, S, D) for the current batch element
        x = x_ref[0].astype(jnp.float32)                                  # (S, D)

        # Single fused projection for q1,k1,v1,q2,k2,v2: one MXU push, N = 6A.
        qkv = (jnp.dot(x, wqkv_ref[...], preferred_element_type=jnp.float32)
               + bqkv_ref[...])                                           # (S, 6A)

        def head(h):
            base = 3 * A * h
            # scale folded into q: (S,A) mul instead of (S,S)
            q = qkv[:, base:base + A] * scale                             # (S, A)
            k = qkv[:, base + A:base + 2 * A]                             # (S, A)
            v = qkv[:, base + 2 * A:base + 3 * A]                         # (S, A)
            # q @ k^T without an explicit transpose: contract last dims.
            s = lax.dot_general(q, k,
                                dimension_numbers=(((1,), (1,)), ((), ())),
                                preferred_element_type=jnp.float32)       # (S, S)
            m = jnp.max(s, axis=-1, keepdims=True)
            p = jnp.exp(s - m)
            denom = jnp.sum(p, axis=-1, keepdims=True)
            p = p * pl.reciprocal(denom, approx=True)                     # softmax(-1)
            return jnp.dot(p, v, preferred_element_type=jnp.float32)      # (S, A)

        h1 = head(0)
        h2 = head(1)

        # No lane-axis concat: split the output projection into two dots.
        wo = wo_ref[...]                                                  # (2A, D)
        out = (jnp.dot(h1, wo[:A, :], preferred_element_type=jnp.float32)
               + jnp.dot(h2, wo[A:, :], preferred_element_type=jnp.float32)
               + bo_ref[...])                                             # (S, D)
        o_ref[0] = out.astype(o_ref.dtype)

    return kernel


@partial(jax.jit, static_argnums=(2,))
def attention_forward(x, params, attention_dims):
    """x: (B, D, W, H) NCHW (PyTorch convention).  Returns (B, D, W, H)."""
    B, D, W, H = x.shape
    S = W * H
    A = attention_dims

    # permute(0,2,3,1).view(B, -1, D)
    x_seq = jnp.transpose(x, (0, 2, 3, 1)).reshape(B, S, D)

    (wq1, bq1, wk1, bk1, wv1, bv1,
     wq2, bq2, wk2, bk2, wv2, bv2, wo, bo) = params

    # Pack all six projections into one weight/bias pair (layout plumbing,
    # done once under jit).
    w_qkv = jnp.concatenate([wq1, wk1, wv1, wq2, wk2, wv2], axis=1)  # (D, 6A)
    b_qkv = jnp.concatenate([bq1, bk1, bv1, bq2, bk2, bv2], axis=1)  # (1, 6A)

    # Weights / biases: constant index_map -> stay resident in VMEM across
    # the batch grid.
    full2d = lambda shape: pl.BlockSpec(shape, lambda b: (0, 0))

    out_seq = pl.pallas_call(
        _attention_kernel(A),
        out_shape=jax.ShapeDtypeStruct((B, S, D), x.dtype),
        grid_spec=pltpu.PrefetchScalarGridSpec(
            num_scalar_prefetch=0,
            grid=(B,),
            in_specs=[
                pl.BlockSpec((1, S, D), lambda b: (b, 0, 0)),   # x_seq (per batch)
                full2d((D, 6 * A)),                             # packed QKV weights
                full2d((1, 6 * A)),                             # packed QKV biases
                full2d((2 * A, D)),                             # out-projection W
                full2d((1, D)),                                 # out-projection b
            ],
            out_specs=pl.BlockSpec((1, S, D), lambda b: (b, 0, 0)),
        ),
        compiler_params=pltpu.CompilerParams(
            dimension_semantics=("parallel",)),
    )(x_seq, w_qkv, b_qkv, wo, bo)

    # PyTorch does a raw reshape (no permute back):
    return out_seq.reshape(B, D, W, H)


def init_params(key, input_dims, attention_dims):
    """Deterministic synthetic parameters (PyTorch Linear shapes, stored transposed)."""
    D, A = input_dims, attention_dims
    keys = jax.random.split(key, 14)
    sc_in = 1.0 / (D ** 0.5)
    sc_proj = 1.0 / ((2 * A) ** 0.5)

    def lin(kw, kb, in_dim, out_dim, sc):
        w = jax.random.uniform(kw, (in_dim, out_dim), jnp.float32, -sc, sc)
        b = jax.random.uniform(kb, (1, out_dim), jnp.float32, -sc, sc)
        return w, b

    wq1, bq1 = lin(keys[0], keys[1], D, A, sc_in)
    wk1, bk1 = lin(keys[2], keys[3], D, A, sc_in)
    wv1, bv1 = lin(keys[4], keys[5], D, A, sc_in)
    wq2, bq2 = lin(keys[6], keys[7], D, A, sc_in)
    wk2, bk2 = lin(keys[8], keys[9], D, A, sc_in)
    wv2, bv2 = lin(keys[10], keys[11], D, A, sc_in)
    wo, bo = lin(keys[12], keys[13], 2 * A, D, sc_proj)
    return (wq1, bq1, wk1, bk1, wv1, bv1,
            wq2, bq2, wk2, bk2, wv2, bv2, wo, bo)


def attention_reference(x, params, attention_dims):
    """Pure-JAX reference mirroring the PyTorch forward exactly."""
    B, D, W, H = x.shape
    x_seq = jnp.transpose(x, (0, 2, 3, 1)).reshape(B, W * H, D)
    (wq1, bq1, wk1, bk1, wv1, bv1,
     wq2, bq2, wk2, bk2, wv2, bv2, wo, bo) = params

    def head(wq, bq, wk, bk, wv, bv):
        q = x_seq @ wq + bq
        k = x_seq @ wk + bk
        v = x_seq @ wv + bv
        s = jnp.einsum("bsa,bta->bst", q, k) / (attention_dims ** 0.5)
        return jax.nn.softmax(s, axis=-1) @ v

    h1 = head(wq1, bq1, wk1, bk1, wv1, bv1)
    h2 = head(wq2, bq2, wk2, bk2, wv2, bv2)
    mh = jnp.concatenate([h1, h2], axis=-1)
    out = mh @ wo + bo
    return out.reshape(B, D, W, H)


if __name__ == "__main__":
    B, D, W, H = 2, 8, 8, 8          # batch, filters (input_dims), spatial
    attention_dims = 16

    key = jax.random.PRNGKey(0)
    kx, kp = jax.random.split(key)
    x = jax.random.normal(kx, (B, D, W, H), jnp.float32)
    params = init_params(kp, D, attention_dims)

    out = attention_forward(x, params, attention_dims)
    out = jax.block_until_ready(out)

    ref = attention_reference(x, params, attention_dims)
    assert out.shape == (B, D, W, H)
    # Tolerance relaxed slightly vs. exact softmax because the kernel uses the
    # EUP approximate reciprocal for the softmax denominator (~2^-12 rel err).
    assert jnp.allclose(out, ref, atol=1e-3, rtol=1e-3), "mismatch vs reference"
    print("KERNEL_OK")
</pallas_src>

<mosaic_0001>
module attributes {stable_mosaic.version = 11 : i64} {
  func.func @kernel(%arg0: i32, %arg1: memref<1x64x8xf32, #tpu.memory_space<vmem>>, %arg2: memref<8x96xf32, #tpu.memory_space<vmem>>, %arg3: memref<1x96xf32, #tpu.memory_space<vmem>>, %arg4: memref<32x8xf32, #tpu.memory_space<vmem>>, %arg5: memref<1x8xf32, #tpu.memory_space<vmem>>, %arg6: memref<1x64x8xf32, #tpu.memory_space<vmem>>) attributes {dimension_semantics = [#tpu.dimension_semantics<parallel>], iteration_bounds = array<i64: 2>, scalar_prefetch = 0 : i64, scratch_operands = 0 : i64, tpu.core_type = #tpu.core_type<tc>, window_params = [{transform_indices = @transform_0, window_bounds = array<i64: 1, 64, 8>}, {pipeline_mode = #tpu.pipeline_mode<synchronous>, transform_indices = @transform_1, window_bounds = array<i64: 8, 96>}, {pipeline_mode = #tpu.pipeline_mode<synchronous>, transform_indices = @transform_2, window_bounds = array<i64: 1, 96>}, {pipeline_mode = #tpu.pipeline_mode<synchronous>, transform_indices = @transform_3, window_bounds = array<i64: 32, 8>}, {pipeline_mode = #tpu.pipeline_mode<synchronous>, transform_indices = @transform_4, window_bounds = array<i64: 1, 8>}, {transform_indices = @transform_5, window_bounds = array<i64: 1, 64, 8>}]} {
    %c0 = arith.constant 0 : index
    %c0_0 = arith.constant 0 : index
    %c0_1 = arith.constant 0 : index
    %0 = vector.load %arg1[%c0, %c0_0, %c0_1] : memref<1x64x8xf32, #tpu.memory_space<vmem>>, vector<1x64x8xf32>
    %1 = vector.shape_cast %0 : vector<1x64x8xf32> to vector<64x8xf32>
    %c0_2 = arith.constant 0 : index
    %c0_3 = arith.constant 0 : index
    %2 = vector.load %arg2[%c0_2, %c0_3] : memref<8x96xf32, #tpu.memory_space<vmem>>, vector<8x96xf32>
    %cst = arith.constant dense<0.000000e+00> : vector<64x96xf32>
    %3 = tpu.matmul %1, %2, %cst {dimension_numbers = #tpu.dot_dimension_numbers<[1], [0], [0], [1], [0, 0, 1, 1], [], []>} : vector<64x8xf32>, vector<8x96xf32>, vector<64x96xf32> -> vector<64x96xf32>
    %c0_4 = arith.constant 0 : index
    %c0_5 = arith.constant 0 : index
    %4 = vector.load %arg3[%c0_4, %c0_5] : memref<1x96xf32, #tpu.memory_space<vmem>>, vector<1x96xf32>
    %5 = vector.broadcast %4 : vector<1x96xf32> to vector<64x96xf32>
    %6 = arith.addf %3, %5 : vector<64x96xf32>
    %7 = vector.extract_strided_slice %6 {offsets = [0, 0], sizes = [64, 16], strides = [1, 1]} : vector<64x96xf32> to vector<64x16xf32>
    %cst_6 = arith.constant 2.500000e-01 : f32
    %8 = vector.broadcast %cst_6 : f32 to vector<64x16xf32>
    %9 = arith.mulf %7, %8 : vector<64x16xf32>
    %10 = vector.extract_strided_slice %6 {offsets = [0, 16], sizes = [64, 16], strides = [1, 1]} : vector<64x96xf32> to vector<64x16xf32>
    %11 = vector.extract_strided_slice %6 {offsets = [0, 32], sizes = [64, 16], strides = [1, 1]} : vector<64x96xf32> to vector<64x16xf32>
    %cst_7 = arith.constant dense<0.000000e+00> : vector<64x64xf32>
    %12 = tpu.matmul %9, %10, %cst_7 {dimension_numbers = #tpu.dot_dimension_numbers<[1], [1], [0], [0], [0, 0, 1, 0], [], []>} : vector<64x16xf32>, vector<64x16xf32>, vector<64x64xf32> -> vector<64x64xf32>
    %cst_8 = arith.constant dense<0xFF800000> : vector<64xf32>
    %13 = vector.multi_reduction <maximumf>, %12, %cst_8 [1] : vector<64x64xf32> to vector<64xf32>
    %14 = vector.shape_cast %13 : vector<64xf32> to vector<64x1xf32>
    %15 = vector.broadcast %14 : vector<64x1xf32> to vector<64x64xf32>
    %16 = arith.subf %12, %15 : vector<64x64xf32>
    %17 = math.exp %16 : vector<64x64xf32>
    %cst_9 = arith.constant dense<0.000000e+00> : vector<64xf32>
    %18 = vector.multi_reduction <add>, %17, %cst_9 [1] : vector<64x64xf32> to vector<64xf32>
    %19 = vector.shape_cast %18 : vector<64xf32> to vector<64x1xf32>
    %20 = tpu.reciprocal %19 {approx = true} : vector<64x1xf32> -> vector<64x1xf32>
    %21 = vector.broadcast %20 : vector<64x1xf32> to vector<64x64xf32>
    %22 = arith.mulf %17, %21 : vector<64x64xf32>
    %cst_10 = arith.constant dense<0.000000e+00> : vector<64x16xf32>
    %23 = tpu.matmul %22, %11, %cst_10 {dimension_numbers = #tpu.dot_dimension_numbers<[1], [0], [0], [1], [0, 0, 1, 1], [], []>} : vector<64x64xf32>, vector<64x16xf32>, vector<64x16xf32> -> vector<64x16xf32>
    %24 = vector.extract_strided_slice %6 {offsets = [0, 48], sizes = [64, 16], strides = [1, 1]} : vector<64x96xf32> to vector<64x16xf32>
    %cst_11 = arith.constant 2.500000e-01 : f32
    %25 = vector.broadcast %cst_11 : f32 to vector<64x16xf32>
    %26 = arith.mulf %24, %25 : vector<64x16xf32>
    %27 = vector.extract_strided_slice %6 {offsets = [0, 64], sizes = [64, 16], strides = [1, 1]} : vector<64x96xf32> to vector<64x16xf32>
    %28 = vector.extract_strided_slice %6 {offsets = [0, 80], sizes = [64, 16], strides = [1, 1]} : vector<64x96xf32> to vector<64x16xf32>
    %cst_12 = arith.constant dense<0.000000e+00> : vector<64x64xf32>
    %29 = tpu.matmul %26, %27, %cst_12 {dimension_numbers = #tpu.dot_dimension_numbers<[1], [1], [0], [0], [0, 0, 1, 0], [], []>} : vector<64x16xf32>, vector<64x16xf32>, vector<64x64xf32> -> vector<64x64xf32>
    %cst_13 = arith.constant dense<0xFF800000> : vector<64xf32>
    %30 = vector.multi_reduction <maximumf>, %29, %cst_13 [1] : vector<64x64xf32> to vector<64xf32>
    %31 = vector.shape_cast %30 : vector<64xf32> to vector<64x1xf32>
    %32 = vector.broadcast %31 : vector<64x1xf32> to vector<64x64xf32>
    %33 = arith.subf %29, %32 : vector<64x64xf32>
    %34 = math.exp %33 : vector<64x64xf32>
    %cst_14 = arith.constant dense<0.000000e+00> : vector<64xf32>
    %35 = vector.multi_reduction <add>, %34, %cst_14 [1] : vector<64x64xf32> to vector<64xf32>
    %36 = vector.shape_cast %35 : vector<64xf32> to vector<64x1xf32>
    %37 = tpu.reciprocal %36 {approx = true} : vector<64x1xf32> -> vector<64x1xf32>
    %38 = vector.broadcast %37 : vector<64x1xf32> to vector<64x64xf32>
    %39 = arith.mulf %34, %38 : vector<64x64xf32>
    %cst_15 = arith.constant dense<0.000000e+00> : vector<64x16xf32>
    %40 = tpu.matmul %39, %28, %cst_15 {dimension_numbers = #tpu.dot_dimension_numbers<[1], [0], [0], [1], [0, 0, 1, 1], [], []>} : vector<64x64xf32>, vector<64x16xf32>, vector<64x16xf32> -> vector<64x16xf32>
    %c0_16 = arith.constant 0 : index
    %c0_17 = arith.constant 0 : index
    %41 = vector.load %arg4[%c0_16, %c0_17] : memref<32x8xf32, #tpu.memory_space<vmem>>, vector<32x8xf32>
    %42 = vector.extract_strided_slice %41 {offsets = [0, 0], sizes = [16, 8], strides = [1, 1]} : vector<32x8xf32> to vector<16x8xf32>
    %cst_18 = arith.constant dense<0.000000e+00> : vector<64x8xf32>
    %43 = tpu.matmul %23, %42, %cst_18 {dimension_numbers = #tpu.dot_dimension_numbers<[1], [0], [0], [1], [0, 0, 1, 1], [], []>} : vector<64x16xf32>, vector<16x8xf32>, vector<64x8xf32> -> vector<64x8xf32>
    %44 = vector.extract_strided_slice %41 {offsets = [16, 0], sizes = [16, 8], strides = [1, 1]} : vector<32x8xf32> to vector<16x8xf32>
    %cst_19 = arith.constant dense<0.000000e+00> : vector<64x8xf32>
    %45 = tpu.matmul %40, %44, %cst_19 {dimension_numbers = #tpu.dot_dimension_numbers<[1], [0], [0], [1], [0, 0, 1, 1], [], []>} : vector<64x16xf32>, vector<16x8xf32>, vector<64x8xf32> -> vector<64x8xf32>
    %46 = arith.addf %43, %45 : vector<64x8xf32>
    %c0_20 = arith.constant 0 : index
    %c0_21 = arith.constant 0 : index
    %47 = vector.load %arg5[%c0_20, %c0_21] : memref<1x8xf32, #tpu.memory_space<vmem>>, vector<1x8xf32>
    %48 = vector.broadcast %47 : vector<1x8xf32> to vector<64x8xf32>
    %49 = arith.addf %46, %48 : vector<64x8xf32>
    %c0_22 = arith.constant 0 : index
    %c0_23 = arith.constant 0 : index
    %c0_24 = arith.constant 0 : index
    %50 = vector.load %arg6[%c0_22, %c0_23, %c0_24] : memref<1x64x8xf32, #tpu.memory_space<vmem>>, vector<1x64x8xf32>
    %51 = vector.shape_cast %50 : vector<1x64x8xf32> to vector<64x8xf32>
    %52 = vector.shape_cast %49 : vector<64x8xf32> to vector<1x64x8xf32>
    tpu.vector_store %arg6[%c0_22, %c0_23, %c0_24], %52 {strides = array<i32>} : memref<1x64x8xf32, #tpu.memory_space<vmem>>, vector<1x64x8xf32>,
    return
  }
  func.func @transform_0(%arg0: i32) -> (i32, i32, i32) {
    %c0_i32 = arith.constant 0 : i32
    %c0_i32_0 = arith.constant 0 : i32
    %c0_i32_1 = arith.constant 0 : i32
    return %arg0, %c0_i32, %c0_i32_0 : i32, i32, i32
  }
  func.func @transform_1(%arg0: i32) -> (i32, i32) {
    %c0_i32 = arith.constant 0 : i32
    %c0_i32_0 = arith.constant 0 : i32
    %c0_i32_1 = arith.constant 0 : i32
    return %c0_i32, %c0_i32_0 : i32, i32
  }
  func.func @transform_2(%arg0: i32) -> (i32, i32) {
    %c0_i32 = arith.constant 0 : i32
    %c0_i32_0 = arith.constant 0 : i32
    %c0_i32_1 = arith.constant 0 : i32
    return %c0_i32, %c0_i32_0 : i32, i32
  }
  func.func @transform_3(%arg0: i32) -> (i32, i32) {
    %c0_i32 = arith.constant 0 : i32
    %c0_i32_0 = arith.constant 0 : i32
    %c0_i32_1 = arith.constant 0 : i32
    return %c0_i32, %c0_i32_0 : i32, i32
  }
  func.func @transform_4(%arg0: i32) -> (i32, i32) {
    %c0_i32 = arith.constant 0 : i32
    %c0_i32_0 = arith.constant 0 : i32
    %c0_i32_1 = arith.constant 0 : i32
    return %c0_i32, %c0_i32_0 : i32, i32
  }
  func.func @transform_5(%arg0: i32) -> (i32, i32, i32) {
    %c0_i32 = arith.constant 0 : i32
    %c0_i32_0 = arith.constant 0 : i32
    %c0_i32_1 = arith.constant 0 : i32
    return %arg0, %c0_i32, %c0_i32_0 : i32, i32, i32
  }
}

</mosaic_0001>

<bundles_post_ra>
// kernel: attention_forward.1
= control target key start
LH: loop header
LB: loop body
LE: loop exit
PB: predicated region body
PF: predicated region fallthrough
CT: control target
= control target key end

     0   :  { %10 = vsyncpa [#allocation3], 0  ;;  %s1859_s0 = inlined_call_operand.vmem [shape: f32[2,64,8], index: 0, kind: input, shape index: {}]   ;;  %s1860_s1 = inlined_call_operand.vmem [shape: f32[8,96], index: 1, kind: input, shape index: {}]   ;;  %s1861_s2 = inlined_call_operand.vmem [shape: f32[1,96], index: 2, kind: input, shape index: {}]   ;;  %s1862_s3 = inlined_call_operand.vmem [shape: f32[32,8], index: 3, kind: input, shape index: {}]   ;;  %s1863_s4 = inlined_call_operand.vmem [shape: f32[1,8], index: 4, kind: input, shape index: {}]   ;;  %s1864_s5 = inlined_call_operand.hbm [shape: f32[2,64,8], index: 5, kind: output, shape index: {}]  }
   0x1   :  { %12 = vsyncpa [#allocation3 + $0x1], 0  ;;  %s1451_s18 = smov 0   ;;  %s1453_s19 = smov 0  }
   0x2   :  { %s1455_s20 = smov 0   ;;  %s1457_s21 = smov 0  }
   0x3 LB: > { %s1472_s22 = sadd.s32 4294967295, %s1412_s21   ;;  %s1108_s23 = sadd.s32 4294967294, %s1412_s21   ;;  %s1412_s21 = sphi %s1457_s21, %s1870_s21   ;;  %s1408_s20 = sphi %s1455_s20, %s1869_s20   ;;  %s1404_s19 = sphi %s1453_s19, %s1868_s19   ;;  %s1400_s18 = sphi %s1451_s18, %s1867_s18  }
   0x4   : > { %s1476_s24 = sadd.s32 1, %s1412_s21   ;;  %s135_s25 = sadd.s32 1, %s1408_s20 }
   0x5   : > { %s132_s26 = ssub.s32 %s1412_s21, %s1476_s24  ;;  %p145_p0 = scmp.ne.s32.totalorder %s1408_s20, %s1404_s19 }
   0x6   : > { %p133_p1 = scmp.eq.s32.totalorder %s132_s26, 0  ;;  %p146_p2 = scmp.eq.s32.totalorder %s1472_s22, 1 }
   0x7   : > { %p151_p3 = scmp.ne.s32.totalorder %s1404_s19, %s1400_s18  ;;  %p152_p4 = scmp.eq.s32.totalorder %s1108_s23, 1 }
   0x8   : > { %s1487_s27 = scalar_select %p133_p1, %s1408_s20, %s135_s25  }
   0x9   : > { %p1489_p5 = por %p146_p2, %p145_p0  ;;  %p1493_p6 = por %p152_p4, %p151_p3 }
   0xa   : > { %p1111_p7 = scmp.ge.s32.totalorder %s1412_s21, 1  ;;  %p190_p8 = scmp.lt.s32.totalorder %s1412_s21, 3 }
   0xc   : > { %p191_p9 = pnand %p1111_p7, %p190_p8 }
   0xd   : > { %p218_p10 = scmp.lt.s32.totalorder (!%p191_p9), %s1472_s22, 1  ;;  %s1414_s14 = smov (!%p191_p9), 64  }
   0xe   : > { %194 = sbr.rel (%p191_p9) target bundleno = 1237 (0x4d5), region = 40  ;;  %s1415_s15 = smov (!%p191_p9), 112  }
   0xf   : > { %s1416_s16 = smov (!%p191_p9), 80   ;;  %s1417_s17 = smov (!%p191_p9), 48  }
  0x10   : > { %s1418_s23 = smov (!%p191_p9), 96   ;;  %s1370_s10 = scalar_lea.hbm (!%p191_p9), %s1864_s5, 128 }
  0x13   : > { %v231_v0 = vld [vmem:[%s1860_s1] sm:$0xff]  ;;  %s219_s7 = scalar_select %p218_p10, %s1472_s22, 1  ;;  %vm236_vm0 = vcmask 64512   ;;  %vm334_vm1 = vcmask 130048   ;;  %vm416_vm2 = vcmask 523264  }
  0x14   : > { %276 = vmatpush.msra.mxu0 %v231_v0  ;;  %v1284_v12 = vld [vmem:[%s1861_s2] ss:$0 sm:$0xff] }
  0x15   : > { %s1192_s8 = sshll.u32 %s219_s7, 6 }
  0x16   : > { %s222_s11 = scalar_lea.vmem %s1859_s0, %s1192_s8 }
  0x17   : > { %v223_v1 = vld [vmem:[%s222_s11] sm:$0xff]  ;;  %v224_v2 = vld [vmem:[%s222_s11 + $0x8] sm:$0xff]  ;;  %v225_v3 = vld [vmem:[%s222_s11 + $0x10] sm:$0xff] }
  0x18   : > { %1115 = vmatmul.msk.f32.vlgmr.msra.gmra.mxu0 %vm236_vm0, %v223_v1  ;;  %v226_v4 = vld [vmem:[%s222_s11 + $0x18] sm:$0xff]  ;;  %v227_v5 = vld [vmem:[%s222_s11 + $0x20] sm:$0xff]  ;;  %v228_v6 = vld [vmem:[%s222_s11 + $0x28] sm:$0xff] }
  0x19   : > { %v229_v7 = vld [vmem:[%s222_s11 + $0x30] sm:$0xff]  ;;  %v230_v8 = vld [vmem:[%s222_s11 + $0x38] sm:$0xff]  ;;  %s215_s11 = sand.u32 1, %s1404_s19  }
  0x1a   : > { %s1112_s12 = sshll.u32 %s215_s11, 6  ;;  %s1031_s6 = scalar_lea.sflag [#allocation3], %s215_s11 }
  0x20   : > { %1116 = vmatmul.msk.f32.gmra.mxu0 %vm236_vm0, %v224_v2 }
  0x28   : > { %1117 = vmatmul.msk.f32.gmra.mxu0 %vm236_vm0, %v225_v3 }
  0x30   : > { %1118 = vmatmul.msk.f32.gmra.mxu0 %vm236_vm0, %v226_v4 }
  0x38   : > { %1119 = vmatmul.msk.f32.gmra.mxu0 %vm236_vm0, %v227_v5 }
  0x40   : > { %1120 = vmatmul.msk.f32.gmra.mxu0 %vm236_vm0, %v228_v6 }
  0x48   : > { %1121 = vmatmul.msk.f32.gmra.mxu0 %vm236_vm0, %v229_v7 }
  0x50   : > { %1122 = vmatmul.msk.f32.gmra.mxu0 %vm236_vm0, %v230_v8 }
  0x95   : > { %v278_v9 = vpop.f32.mrf.mxu0 }
  0x96   : > { %v279_v26 = vadd.f32 %v1284_v12, %v278_v9 }
  0x98   : > { %v1528_v27 = vmul.f32 0.25, %v279_v26 }
  0x9d   : > { %v281_v10 = vpop.f32.mrf.mxu0 }
  0x9e   : > { %v282_v25 = vadd.f32 %v1284_v12, %v281_v10 }
  0xa0   : > { %v1533_v28 = vmul.f32 0.25, %v282_v25  ;;  %v1552_v33 = vpack.i.bf16 %v279_v26, %v282_v25 }
  0xa5   : > { %v284_v11 = vpop.f32.mrf.mxu0 }
  0xa6   : > { %v285_v16 = vadd.f32 %v1284_v12, %v284_v11 }
  0xa8   : > { %v1540_v30 = vmul.f32 0.25, %v285_v16 }
  0xad   : > { %v287_v13 = vpop.f32.mrf.mxu0 }
  0xae   : > { %v288_v14 = vadd.f32 %v1284_v12, %v287_v13 }
  0xb0   : > { %616 = vrot.lane.b32.xlu2 %v288_v14, %s1414_s14  ;;  %v1547_v32 = vmul.f32 0.25, %v288_v14  ;;  %v1565_v38 = vpack.i.bf16 %v285_v16, %v288_v14 }
  0xb5   : > { %v290_v15 = vpop.f32.mrf.mxu0 }
  0xb6   : > { %v291_v18 = vadd.f32 %v1284_v12, %v290_v15 }
  0xb8   : > { %614 = vrot.lane.b32.xlu2 %v285_v16, %s1414_s14  ;;  %v1538_v29 = vmul.f32 0.25, %v291_v18 }
  0xbd   : > { %v293_v17 = vpop.f32.mrf.mxu0 }
  0xbe   : > { %v294_v19 = vadd.f32 %v1284_v12, %v293_v17 }
  0xc0   : > { %620 = vrot.lane.b32.xlu1 %v294_v19, %s1414_s14  ;;  %v1521_v20 = vpack.i.bf16 %v291_v18, %v294_v19  ;;  %v1562_v36 = vmul.f32 0.25, %v294_v19 }
  0xc5   : > { %v296_v21 = vpop.f32.mrf.mxu0 }
  0xc6   : > { %v297_v22 = vadd.f32 %v1284_v12, %v296_v21 }
  0xc8   : > { %618 = vrot.lane.b32.xlu1 %v291_v18, %s1414_s14  ;;  %330 = vrot.lane.b32.xlu2 %v297_v22, %s1415_s15  ;;  %v1554_v34 = vmul.f32 0.25, %v297_v22 }
  0xcd   : > { %v299_v23 = vpop.f32.mrf.mxu0 }
  0xce   : > { %v300_v24 = vadd.f32 %v1284_v12, %v299_v23 }
  0xd0   : > { %624 = vrot.lane.b32.xlu0 %v300_v24, %s1414_s14  ;;  %328 = vrot.lane.b32.xlu2 %v294_v19, %s1415_s15  ;;  %v1545_v31 = vmul.f32 0.25, %v300_v24  ;;  %v1264_v35 = vpack.i.bf16 %v297_v22, %v300_v24 }
  0xd1   : > { %612 = vrot.lane.b32.xlu1 %v282_v25, %s1414_s14 }
  0xd8   : > { %622 = vrot.lane.b32.xlu0 %v297_v22, %s1414_s14  ;;  %324 = vrot.lane.b32.xlu2 %v288_v14, %s1415_s15 }
  0xd9   : > { %594 = vrot.lane.b32.xlu1 %v1528_v27, %s1416_s16 }
  0xe0   : > { %332 = vrot.lane.b32.xlu0 %v300_v24, %s1415_s15  ;;  %320 = vrot.lane.b32.xlu2 %v282_v25, %s1415_s15 }
  0xe1   : > { %596 = vrot.lane.b32.xlu1 %v1533_v28, %s1416_s16 }
  0xe8   : > { %602 = vrot.lane.b32.xlu2 %v1538_v29, %s1416_s16  ;;  %610 = vrot.lane.b32.xlu0 %v279_v26, %s1414_s14 }
  0xe9   : > { %598 = vrot.lane.b32.xlu1 %v1540_v30, %s1416_s16 }
  0xf0   : > { %608 = vrot.lane.b32.xlu2 %v1545_v31, %s1416_s16  ;;  %326 = vrot.lane.b32.xlu0 %v291_v18, %s1415_s15 }
  0xf1   : > { %600 = vrot.lane.b32.xlu1 %v1547_v32, %s1416_s16 }
  0xf8   : > { %1260 = vrot.lane.b32.xlu2 %v1552_v33, %s1417_s17  ;;  %322 = vrot.lane.b32.xlu0 %v285_v16, %s1415_s15 }
  0xf9   : > { %606 = vrot.lane.b32.xlu1 %v1554_v34, %s1416_s16 }
 0x100   : > { %1265 = vrot.lane.b32.xlu2 %v1264_v35, %s1418_s23  ;;  %318 = vrot.lane.b32.xlu0 %v279_v26, %s1415_s15  ;;  %s1807_s15 = scalar_lea.vmem [#allocation2], %s1112_s12 }
 0x101   : > { %1250 = vrot.lane.b32.xlu1 %v1521_v20, %s1417_s17  ;;  %s1043_s26 = sshll.u32 %s1807_s15, 4  ;;  %s1044_s26 = int_to_ptr.vmem [resolvable:$true] %s1043_s26 }
 0x108   : > { %604 = vrot.lane.b32.xlu0 %v1562_v36, %s1416_s16  ;;  %s1193_s16 = sshll.u32 %s1472_s22, 6 }
 0x109   : > { %s1042_s25 = scalar_lea.hbm %s1864_s5, %s1193_s16 }
 0x10a   : > { %v617_v37 = vpop.permute.xlu2 %616  ;;  %s1045_s30 = sshll.u32 %s1042_s25, 4  ;;  %s1046_s30 = int_to_ptr.hbm [resolvable:$true] %s1045_s30 }
 0x10b   : > { %s1364_s7 = sshra.s32 %s1046_s30, 4  ;;  %s1365_s7 = int_to_ptr.hbm [resolvable:$true] %s1364_s7 }
 0x10c   : > { %s1366_s8 = scalar_lea.hbm %s1365_s7, 64  ;;  %p1371_p0 = scmp.lt.s32.totalorder %s1365_s7, %s1864_s5 }
 0x10d   : > { %p1367_p11 = scmp.ne.s32.totalorder %s1365_s7, %s1366_s8  ;;  %p1372_p1 = scmp.lt.s32.totalorder %s1370_s10, %s1366_s8 }
 0x10f   : > { %p1368_p12 = pnand %p1367_p11, %p1489_p5  ;;  %p1373_p2 = por %p1372_p1, %p1371_p0 }
 0x110   : > { %1245 = vrot.lane.b32.xlu0 %v1264_v35, %s1417_s17 }
 0x111   : > { %p1369_p13 = pneg %p1368_p12 }
 0x112   : > { %v615_v39 = vpop.permute.xlu2 %614 }
 0x113   : > { %p1374_p3 = pnand %p1373_p2, %p1369_p13 }
 0x118   : > { %1255 = vrot.lane.b32.xlu0 %v1565_v38, %s1417_s17 }
 0x122   : > { %v331_v40 = vpop.permute.xlu2 %330 }
 0x12a   : > { %v329_v41 = vpop.permute.xlu2 %328 }
 0x132   : > { %v325_v42 = vpop.permute.xlu2 %324  ;;  %v621_v43 = vpop.permute.xlu1 %620 }
 0x13a   : > { %v321_v44 = vpop.permute.xlu2 %320  ;;  %v619_v45 = vpop.permute.xlu1 %618 }
 0x142   : > { %v625_v46 = vpop.permute.xlu0 %624  ;;  %v603_v47 = vpop.permute.xlu2 %602 }
 0x143   : > { %1147 = vmatpush.xpose.msk.msra.mxu3 %vm334_vm1, %v625_v46  ;;  %v613_v48 = vpop.permute.xlu1 %612 }
 0x14a   : > { %v623_v49 = vpop.permute.xlu0 %622  ;;  %v1569_v50 = vpop.permute.xlu2 %608 }
 0x14b   : > { %1148 = vmatpush.xpose.msk.msra.mxu3 %vm334_vm1, %v623_v49  ;;  %v595_v51 = vpop.permute.xlu1 %594 }
 0x14f   : > { %1149 = vmatpush.xpose.msk.msra.mxu3 %vm334_vm1, %v621_v43 }
 0x152   : > { %v333_v52 = vpop.permute.xlu0 %332  ;;  %v1261_v53 = vpop.permute.xlu2 %1260 }
 0x153   : > { %1123 = vmatpush.xpose.msk.msra.mxu1 %vm334_vm1, %v333_v52  ;;  %1150 = vmatpush.xpose.msk.msra.mxu3 %vm334_vm1, %v619_v45  ;;  %v597_v57 = vpop.permute.xlu1 %596  ;;  %v1262_v11 = vunpack.i.l.bf16 %v1261_v53  ;;  %v1263_v12 = vunpack.i.h.bf16 %v1261_v53 }
 0x157   : > { %1124 = vmatpush.xpose.msk.msra.mxu1 %vm334_vm1, %v331_v40  ;;  %1151 = vmatpush.xpose.msk.msra.mxu3 %vm334_vm1, %v617_v37 }
 0x15a   : > { %v1266_v54 = vpop.permute.xlu2 %1265  ;;  %v611_v55 = vpop.permute.xlu0 %610 }
 0x15b   : > { %1125 = vmatpush.xpose.msk.msra.mxu1 %vm334_vm1, %v329_v41  ;;  %1152 = vmatpush.xpose.msk.msra.mxu3 %vm334_vm1, %v615_v39  ;;  %v1267_v56 = vunpack.i.l.bf16 %v1266_v54  ;;  %v1268_v58 = vunpack.i.h.bf16 %v1266_v54  ;;  %v599_v60 = vpop.permute.xlu1 %598 }
 0x15d   : > { %561 = vmatpush.msra.mxu2 %v1267_v56 }
 0x15f   : > { %562 = vmatpush.msra.mxu2 %v1268_v58  ;;  %1153 = vmatpush.xpose.msk.msra.mxu3 %vm334_vm1, %v613_v48 }
 0x162   : > { %v327_v59 = vpop.permute.xlu0 %326 }
 0x163   : > { %1126 = vmatpush.xpose.msk.msra.mxu1 %vm334_vm1, %v327_v59  ;;  %1154 = vmatpush.xpose.msk.msra.mxu3 %vm334_vm1, %v611_v55  ;;  %v601_v62 = vpop.permute.xlu1 %600 }
 0x166   : > { %1155 = vmatmul.msk.f32.vlgmr.msra.gmra.mxu3 %vm334_vm1, %v595_v51 }
 0x167   : > { %1127 = vmatpush.xpose.msk.msra.mxu1 %vm334_vm1, %v325_v42 }
 0x16a   : > { %v323_v61 = vpop.permute.xlu0 %322 }
 0x16b   : > { %1128 = vmatpush.xpose.msk.msra.mxu1 %vm334_vm1, %v323_v61  ;;  %v607_v0 = vpop.permute.xlu1 %606 }
 0x16e   : > { %1156 = vmatmul.msk.f32.gmra.mxu3 %vm334_vm1, %v597_v57 }
 0x16f   : > { %1129 = vmatpush.xpose.msk.msra.mxu1 %vm334_vm1, %v321_v44 }
 0x172   : > { %v319_v63 = vpop.permute.xlu0 %318 }
 0x173   : > { %1130 = vmatpush.xpose.msk.msra.mxu1 %vm334_vm1, %v319_v63  ;;  %v1251_v4 = vpop.permute.xlu1 %1250 }
 0x174   : > { %v1252_v6 = vunpack.i.l.bf16 %v1251_v4  ;;  %v1253_v7 = vunpack.i.h.bf16 %v1251_v4 }
 0x176   : > { %1131 = vmatmul.msk.f32.vlgmr.msra.gmra.mxu1 %vm334_vm1, %v1528_v27  ;;  %1157 = vmatmul.msk.f32.gmra.mxu3 %vm334_vm1, %v599_v60 }
 0x17a   : > { %v605_v1 = vpop.permute.xlu0 %604 }
 0x17e   : > { %1132 = vmatmul.msk.f32.gmra.mxu1 %vm334_vm1, %v1533_v28  ;;  %1158 = vmatmul.msk.f32.gmra.mxu3 %vm334_vm1, %v601_v62 }
 0x182   : > { %v1246_v2 = vpop.permute.xlu0 %1245 }
 0x183   : > { %v1247_v3 = vunpack.i.l.bf16 %v1246_v2  ;;  %v1248_v5 = vunpack.i.h.bf16 %v1246_v2 }
 0x185   : > { %843 = vmatpush.msrb.mxu0 %v1247_v3 }
 0x186   : > { %1133 = vmatmul.msk.f32.gmra.mxu1 %vm334_vm1, %v1540_v30  ;;  %1159 = vmatmul.msk.f32.gmra.mxu3 %vm334_vm1, %v603_v47 }
 0x187   : > { %844 = vmatpush.msrb.mxu0 %v1248_v5 }
 0x189   : > { %845 = vmatpush.msrb.mxu0 %v1252_v6 }
 0x18a   : > { %v1256_v8 = vpop.permute.xlu0 %1255 }
 0x18b   : > { %846 = vmatpush.msrb.mxu0 %v1253_v7  ;;  %v1257_v9 = vunpack.i.l.bf16 %v1256_v8  ;;  %v1258_v10 = vunpack.i.h.bf16 %v1256_v8 }
 0x18d   : > { %847 = vmatpush.msrb.mxu0 %v1257_v9 }
 0x18e   : > { %1134 = vmatmul.msk.f32.gmra.mxu1 %vm334_vm1, %v1547_v32  ;;  %1160 = vmatmul.msk.f32.gmra.mxu3 %vm334_vm1, %v605_v1 }
 0x18f   : > { %848 = vmatpush.msrb.mxu0 %v1258_v10 }
 0x191   : > { %849 = vmatpush.msrb.mxu0 %v1262_v11 }
 0x193   : > { %850 = vmatpush.msrb.mxu0 %v1263_v12 }
 0x196   : > { %1135 = vmatmul.msk.f32.gmra.mxu1 %vm334_vm1, %v1538_v29  ;;  %1161 = vmatmul.msk.f32.gmra.mxu3 %vm334_vm1, %v607_v0 }
 0x19e   : > { %1136 = vmatmul.msk.f32.gmra.mxu1 %vm334_vm1, %v1562_v36  ;;  %1162 = vmatmul.msk.f32.gmra.mxu3 %vm334_vm1, %v1569_v50 }
 0x1a6   : > { %1137 = vmatmul.msk.f32.gmra.mxu1 %vm334_vm1, %v1554_v34 }
 0x1ae   : > { %1138 = vmatmul.msk.f32.gmra.mxu1 %vm334_vm1, %v1545_v31 }
 0x1e9   : > { %v675_v13 = vpop.f32.mrf.mxu3 }
 0x1ea   : > { %v699_v14 = vsel %vm416_vm2, %v675_v13, -inf }
 0x1eb   : > { %700 = vmax.xlane.f32.xlu0 %v699_v14 }
 0x1f1   : > { %v1612_v15 = vpop.f32.mrf.mxu3 }
 0x1f2   : > { %v702_v25 = vsel %vm416_vm2, %v1612_v15, -inf }
 0x1f3   : > { %v392_v16 = vpop.f32.mrf.mxu1 }
 0x1f4   : > { %v417_v17 = vsel %vm416_vm2, %v392_v16, -inf }
 0x1f5   : > { %418 = vmax.xlane.f32.xlu2 %v417_v17 }
 0x1f9   : > { %v1615_v18 = vpop.f32.mrf.mxu3 }
 0x1fa   : > { %v705_v21 = vsel %vm416_vm2, %v1615_v18, -inf }
 0x1fb   : > { %v395_v19 = vpop.f32.mrf.mxu1 }
 0x1fc   : > { %v420_v22 = vsel %vm416_vm2, %v395_v19, -inf }
 0x1fd   : > { %706 = vmax.xlane.f32.xlu2 %v705_v21  ;;  %421 = vmax.xlane.f32.xlu1 %v420_v22 }
 0x201   : > { %v684_v23 = vpop.f32.mrf.mxu3 }
 0x202   : > { %v708_v29 = vsel %vm416_vm2, %v684_v23, -inf }
 0x203   : > { %v1620_v24 = vpop.f32.mrf.mxu1 }
 0x204   : > { %v423_v26 = vsel %vm416_vm2, %v1620_v24, -inf }
 0x205   : > { %703 = vmax.xlane.f32.xlu1 %v702_v25  ;;  %424 = vmax.xlane.f32.xlu0 %v423_v26 }
 0x209   : > { %v1626_v27 = vpop.f32.mrf.mxu3 }
 0x20a   : > { %v711_v40 = vsel %vm416_vm2, %v1626_v27, -inf }
 0x20b   : > { %v1628_v28 = vpop.f32.mrf.mxu1 }
 0x20c   : > { %v426_v30 = vsel %vm416_vm2, %v1628_v28, -inf }
 0x20d   : > { %709 = vmax.xlane.f32.xlu0 %v708_v29  ;;  %427 = vmax.xlane.f32.xlu2 %v426_v30 }
 0x211   : > { %v1633_v31 = vpop.f32.mrf.mxu3 }
 0x212   : > { %v714_v32 = vsel %vm416_vm2, %v1633_v31, -inf }
 0x213   : > { %715 = vmax.xlane.f32.xlu1 %v714_v32  ;;  %v1637_v34 = vpop.f32.mrf.mxu1 }
 0x214   : > { %v429_v35 = vsel %vm416_vm2, %v1637_v34, -inf }
 0x215   : > { %430 = vmax.xlane.f32.xlu2 %v429_v35 }
 0x219   : > { %v1641_v36 = vpop.f32.mrf.mxu3 }
 0x21a   : > { %v717_v37 = vsel %vm416_vm2, %v1641_v36, -inf }
 0x21b   : > { %718 = vmax.xlane.f32.xlu1 %v717_v37  ;;  %v1645_v39 = vpop.f32.mrf.mxu1 }
 0x21c   : > { %v432_v41 = vsel %vm416_vm2, %v1645_v39, -inf }
 0x21d   : > { %712 = vmax.xlane.f32.xlu2 %v711_v40  ;;  %433 = vmax.xlane.f32.xlu0 %v432_v41 }
 0x221   : > { %v1651_v42 = vpop.f32.mrf.mxu3 }
 0x222   : > { %v720_v43 = vsel %vm416_vm2, %v1651_v42, -inf }
 0x223   : > { %v1659_v52 = vpop.f32.mrf.mxu1 }
 0x224   : > { %v435_v55 = vsel %vm416_vm2, %v1659_v52, -inf }
 0x225   : > { %721 = vmax.xlane.f32.xlu2 %v720_v43 }
 0x25e   : > { %v701_v44 = vpop.xlane.xlu0 %700 }
 0x25f   : > { %v723_v45 = vsub.f32 %v675_v13, %v701_v44 }
 0x261   : > { %v731_v46 = vmul.f32 1.442695, %v723_v45 }
 0x263   : > { %1286 = vpow2.f32 %v731_v46  ;;  %v1715_v46 = vpop.f32.mrf.mxu1 }
 0x268   : > { %v419_v47 = vpop.xlane.xlu2 %418 }
 0x269   : > { %v1655_v48 = vpop.eup %1286  ;;  %v441_v49 = vsub.f32 %v392_v16, %v419_v47 }
 0x26a   : > { %v747_v50 = vsel %vm416_vm2, %v1655_v48, 0.0 }
 0x26b   : > { %v449_v51 = vmul.f32 1.442695, %v441_v49  ;;  %748 = vadd.xlane.f32.xlu2 %v747_v50  ;;  %v438_v49 = vsel %vm416_vm2, %v1715_v46, -inf }
 0x26d   : > { %1288 = vpow2.f32 %v449_v51 }
 0x270   : > { %v422_v53 = vpop.xlane.xlu1 %421  ;;  %v707_v7 = vpop.xlane.xlu2 %706 }
 0x271   : > { %v442_v54 = vsub.f32 %v395_v19, %v422_v53 }
 0x273   : > { %v1663_v56 = vpop.eup %1288  ;;  %v451_v57 = vmul.f32 1.442695, %v442_v54  ;;  %436 = vmax.xlane.f32.xlu2 %v435_v55 }
 0x274   : > { %v465_v58 = vsel %vm416_vm2, %v1663_v56, 0.0 }
 0x275   : > { %466 = vadd.xlane.f32.xlu0 %v465_v58  ;;  %1290 = vpow2.f32 %v451_v57 }
 0x278   : > { %v704_v59 = vpop.xlane.xlu1 %703  ;;  %v425_v60 = vpop.xlane.xlu0 %424 }
 0x279   : > { %v724_v61 = vsub.f32 %v1612_v15, %v704_v59  ;;  %v443_v4 = vsub.f32 %v1620_v24, %v425_v60 }
 0x27b   : > { %v733_v62 = vmul.f32 1.442695, %v724_v61  ;;  %v1668_v63 = vpop.eup %1290  ;;  %v453_v8 = vmul.f32 1.442695, %v443_v4 }
 0x27c   : > { %v468_v0 = vsel %vm416_vm2, %v1668_v63, 0.0 }
 0x27d   : > { %1292 = vpow2.f32 %v733_v62  ;;  %469 = vadd.xlane.f32.xlu2 %v468_v0 }
 0x280   : > { %v710_v1 = vpop.xlane.xlu0 %709  ;;  %v428_v13 = vpop.xlane.xlu2 %427 }
 0x281   : > { %v726_v2 = vsub.f32 %v684_v23, %v710_v1  ;;  %v444_v16 = vsub.f32 %v1628_v28, %v428_v13  ;;  %v725_v28 = vsub.f32 %v1615_v18, %v707_v7 }
 0x283   : > { %v1672_v3 = vpop.eup %1292  ;;  %v737_v5 = vmul.f32 1.442695, %v726_v2 }
 0x284   : > { %v750_v6 = vsel %vm416_vm2, %v1672_v3, 0.0 }
 0x285   : > { %1294 = vpow2.f32 %v737_v5  ;;  %751 = vadd.xlane.f32.xlu1 %v750_v6 }
 0x286   : > { %v716_v9 = vpop.xlane.xlu1 %715  ;;  %1296 = vpow2.f32 %v453_v8 }
 0x287   : > { %v728_v11 = vsub.f32 %v1633_v31, %v716_v9  ;;  %v735_v31 = vmul.f32 1.442695, %v725_v28 }
 0x288   : > { %v431_v19 = vpop.xlane.xlu2 %430 }
 0x289   : > { %1275 = vrot.lane.b32.xlu0 %v1565_v38, %s1418_s23  ;;  %v741_v14 = vmul.f32 1.442695, %v728_v11  ;;  %v455_v38 = vmul.f32 1.442695, %v444_v16  ;;  %v445_v22 = vsub.f32 %v1637_v34, %v431_v19 }
 0x28b   : > { %v1679_v10 = vpop.eup %1294  ;;  %1298 = vpow2.f32 %v741_v14  ;;  %v457_v24 = vmul.f32 1.442695, %v445_v22 }
 0x28c   : > { %v756_v12 = vsel %vm416_vm2, %v1679_v10, 0.0  ;;  %v1684_v15 = vpop.eup %1296  ;;  %1300 = vpow2.f32 %v455_v38 }
 0x28d   : > { %757 = vadd.xlane.f32.xlu2 %v756_v12  ;;  %v471_v17 = vsel %vm416_vm2, %v1684_v15, 0.0  ;;  %1302 = vpow2.f32 %v457_v24 }
 0x28e   : > { %1304 = vpow2.f32 %v735_v31  ;;  %v719_v41 = vpop.xlane.xlu1 %718 }
 0x28f   : > { %v729_v43 = vsub.f32 %v1641_v36, %v719_v41 }
 0x290   : > { %v434_v25 = vpop.xlane.xlu0 %433  ;;  %v713_v40 = vpop.xlane.xlu2 %712 }
 0x291   : > { %v1689_v21 = vpop.eup %1298  ;;  %v446_v29 = vsub.f32 %v1645_v39, %v434_v25  ;;  %v743_v44 = vmul.f32 1.442695, %v729_v43 }
 0x292   : > { %v762_v23 = vsel %vm416_vm2, %v1689_v21, 0.0  ;;  %v1696_v26 = vpop.eup %1300 }
 0x293   : > { %v474_v30 = vsel %vm416_vm2, %v1696_v26, 0.0  ;;  %v459_v32 = vmul.f32 1.442695, %v446_v29  ;;  %v1702_v34 = vpop.eup %1302 }
 0x294   : > { %v1706_v35 = vpop.eup %1304 }
 0x295   : > { %472 = vadd.xlane.f32.xlu2 %v471_v17  ;;  %1306 = vpow2.f32 %v459_v32  ;;  %v753_v37 = vsel %vm416_vm2, %v1706_v35, 0.0 }
 0x296   : > { %1308 = vpow2.f32 %v743_v44 }
 0x298   : > { %v722_v45 = vpop.xlane.xlu2 %721 }
 0x299   : > { %v730_v47 = vsub.f32 %v1651_v42, %v722_v45 }
 0x29b   : > { %v1708_v18 = vpop.eup %1306  ;;  %v745_v50 = vmul.f32 1.442695, %v730_v47 }
 0x29c   : > { %v480_v39 = vsel %vm416_vm2, %v1708_v18, 0.0  ;;  %v1722_v51 = vpop.eup %1308 }
 0x29d   : > { %763 = vadd.xlane.f32.xlu2 %v762_v23  ;;  %1310 = vpow2.f32 %v745_v50  ;;  %v765_v36 = vsel %vm416_vm2, %v1722_v51, 0.0 }
 0x29e   : > { %1270 = vrot.lane.b32.xlu1 %v1521_v20, %s1418_s23  ;;  %v477_v20 = vsel %vm416_vm2, %v1702_v34, 0.0 }
 0x2a3   : > { %v1726_v53 = vpop.eup %1310 }
 0x2a4   : > { %v768_v42 = vsel %vm416_vm2, %v1726_v53, 0.0 }
 0x2a5   : > { %475 = vadd.xlane.f32.xlu2 %v474_v30 }
 0x2ad   : > { %478 = vadd.xlane.f32.xlu2 %v477_v20 }
 0x2b3   : > { %754 = vadd.xlane.f32.xlu0 %v753_v37 }
 0x2b5   : > { %481 = vadd.xlane.f32.xlu2 %v480_v39 }
 0x2c7   : > { %1280 = vrot.lane.b32.xlu0 %v1552_v33, %s1418_s23  ;;  %v727_v33 = vsub.f32 %v1626_v27, %v713_v40 }
 0x2c8   : > { %439 = vmax.xlane.f32.xlu1 %v438_v49 }
 0x2c9   : > { %v739_v55 = vmul.f32 1.442695, %v727_v33 }
 0x2d0   : > { %766 = vadd.xlane.f32.xlu1 %v765_v36 }
 0x2d8   : > { %769 = vadd.xlane.f32.xlu1 %v768_v42 }
 0x2de   : > { %v749_v54 = vpop.xlane.xlu2 %748 }
 0x2df   : > { %1312 = vrcp.f32 %v749_v54 }
 0x2e0   : > { %1314 = vpow2.f32 %v739_v55 }
 0x2e5   : > { %v1313_v57 = vpop.eup %1312 }
 0x2e6   : > { %v437_v58 = vpop.xlane.xlu2 %436  ;;  %v779_v59 = vmul.f32 %v1313_v57, %v1655_v48  ;;  %v1734_v62 = vpop.eup %1314 }
 0x2e7   : > { %v447_v60 = vsub.f32 %v1659_v52, %v437_v58  ;;  %v759_v0 = vsel %vm416_vm2, %v1734_v62, 0.0 }
 0x2e8   : > { %1163 = vmatmul.msk.f32.vlgmr.msrb.gmra.mxu0 %vm416_vm2, %v779_v59  ;;  %v467_v4 = vpop.xlane.xlu0 %466 }
 0x2e9   : > { %v461_v61 = vmul.f32 1.442695, %v447_v60 }
 0x2eb   : > { %1316 = vpow2.f32 %v461_v61  ;;  %v876_v61 = vld [vmem:[%s1862_s3] sm:$0xff] }
 0x2f0   : > { %v470_v12 = vpop.xlane.xlu2 %469 }
 0x2f1   : > { %760 = vadd.xlane.f32.xlu0 %v759_v0  ;;  %v1738_v27 = vpop.eup %1316 }
 0x2f2   : > { %v483_v2 = vsel %vm416_vm2, %v1738_v27, 0.0 }
 0x2f8   : > { %v752_v1 = vpop.xlane.xlu1 %751 }
 0x2f9   : > { %1318 = vrcp.f32 %v752_v1  ;;  %484 = vadd.xlane.f32.xlu0 %v483_v2 }
 0x2fb   : > { %v1276_v7 = vpop.permute.xlu0 %1275 }
 0x2fc   : > { %v1277_v9 = vunpack.i.l.bf16 %v1276_v7  ;;  %v1278_v11 = vunpack.i.h.bf16 %v1276_v7 }
 0x2ff   : > { %v1319_v48 = vpop.eup %1318 }
 0x300   : > { %v780_v52 = vmul.f32 %v1319_v48, %v1672_v3  ;;  %v758_v14 = vpop.xlane.xlu2 %757 }
 0x302   : > { %1164 = vmatmul.msk.f32.gmra.mxu0 %vm416_vm2, %v780_v52 }
 0x308   : > { %v473_v17 = vpop.xlane.xlu2 %472 }
 0x310   : > { %v1271_v5 = vpop.permute.xlu1 %1270  ;;  %v764_v25 = vpop.xlane.xlu2 %763 }
 0x311   : > { %v1272_v6 = vunpack.i.l.bf16 %v1271_v5  ;;  %v1273_v8 = vunpack.i.h.bf16 %v1271_v5 }
 0x313   : > { %563 = vmatpush.msra.mxu2 %v1272_v6 }
 0x315   : > { %564 = vmatpush.msra.mxu2 %v1273_v8 }
 0x317   : > { %565 = vmatpush.msra.mxu2 %v1277_v9 }
 0x318   : > { %v476_v20 = vpop.xlane.xlu2 %475 }
 0x319   : > { %566 = vmatpush.msra.mxu2 %v1278_v11 }
 0x320   : > { %v479_v41 = vpop.xlane.xlu2 %478 }
 0x326   : > { %v755_v13 = vpop.xlane.xlu0 %754 }
 0x327   : > { %1320 = vrcp.f32 %v755_v13 }
 0x328   : > { %1322 = vrcp.f32 %v758_v14 }
 0x329   : > { %1324 = vrcp.f32 %v467_v4 }
 0x32a   : > { %1326 = vrcp.f32 %v470_v12 }
 0x32d   : > { %v1321_v16 = vpop.eup %1320 }
 0x32e   : > { %v781_v3 = vmul.f32 %v1321_v16, %v1706_v35  ;;  %v1323_v38 = vpop.eup %1322 }
 0x32f   : > { %v782_v19 = vmul.f32 %v1323_v38, %v1679_v10  ;;  %v1325_v23 = vpop.eup %1324  ;;  %v1285_v38 = vld [vmem:[%s1863_s4] ss:$0 sm:$0xff] }
 0x330   : > { %1165 = vmatmul.msk.f32.gmra.mxu0 %vm416_vm2, %v781_v3  ;;  %v497_v31 = vmul.f32 %v1325_v23, %v1663_v56  ;;  %v1327_v10 = vpop.eup %1326 }
 0x331   : > { %v498_v35 = vmul.f32 %v1327_v10, %v1668_v63  ;;  %v482_v63 = vpop.xlane.xlu2 %481 }
 0x338   : > { %1166 = vmatmul.msk.f32.gmra.mxu0 %vm416_vm2, %v782_v19 }
 0x339   : > { %v1281_v22 = vpop.permute.xlu0 %1280 }
 0x33a   : > { %v1282_v24 = vunpack.i.l.bf16 %v1281_v22  ;;  %v1283_v30 = vunpack.i.h.bf16 %v1281_v22 }
 0x33b   : > { %v440_v28 = vpop.xlane.xlu1 %439 }
 0x33c   : > { %v448_v29 = vsub.f32 %v1715_v46, %v440_v28  ;;  %567 = vmatpush.msra.mxu2 %v1282_v24 }
 0x33e   : > { %v463_v32 = vmul.f32 1.442695, %v448_v29  ;;  %568 = vmatpush.msra.mxu2 %v1283_v30 }
 0x33f   : > { %1139 = vmatmul.msk.f32.vlgmr.msra.gmra.mxu2 %vm416_vm2, %v497_v31 }
 0x340   : > { %1328 = vpow2.f32 %v463_v32 }
 0x341   : > { %1330 = vrcp.f32 %v473_v17 }
 0x342   : > { %1332 = vrcp.f32 %v476_v20 }
 0x343   : > { %1334 = vrcp.f32 %v479_v41  ;;  %v767_v42 = vpop.xlane.xlu1 %766 }
 0x344   : > { %1336 = vrcp.f32 %v482_v63 }
 0x346   : > { %v1329_v37 = vpop.eup %1328 }
 0x347   : > { %1140 = vmatmul.msk.f32.gmra.mxu2 %vm416_vm2, %v498_v35  ;;  %v486_v39 = vsel %vm416_vm2, %v1329_v37, 0.0  ;;  %v1331_v40 = vpop.eup %1330 }
 0x348   : > { %487 = vadd.xlane.f32.xlu1 %v486_v39  ;;  %v499_v56 = vmul.f32 %v1331_v40, %v1684_v15  ;;  %v1333_v43 = vpop.eup %1332 }
 0x349   : > { %v500_v44 = vmul.f32 %v1333_v43, %v1696_v26  ;;  %v1335_v45 = vpop.eup %1334 }
 0x34a   : > { %v501_v46 = vmul.f32 %v1335_v45, %v1702_v34  ;;  %v1337_v47 = vpop.eup %1336 }
 0x34b   : > { %v502_v15 = vmul.f32 %v1337_v47, %v1708_v18  ;;  %v770_v18 = vpop.xlane.xlu1 %769 }
 0x34f   : > { %1141 = vmatmul.msk.f32.gmra.mxu2 %vm416_vm2, %v499_v56 }
 0x357   : > { %1142 = vmatmul.msk.f32.gmra.mxu2 %vm416_vm2, %v500_v44 }
 0x35f   : > { %1143 = vmatmul.msk.f32.gmra.mxu2 %vm416_vm2, %v501_v46 }
 0x364   : > { %v761_v49 = vpop.xlane.xlu0 %760 }
 0x365   : > { %1338 = vrcp.f32 %v761_v49  ;;  %v852_v2 = vpop.f32.mrf.mxu0 }
 0x366   : > { %1340 = vrcp.f32 %v764_v25 }
 0x367   : > { %1144 = vmatmul.msk.f32.gmra.mxu2 %vm416_vm2, %v502_v15 }
 0x36b   : > { %v1339_v50 = vpop.eup %1338 }
 0x36c   : > { %v485_v36 = vpop.xlane.xlu0 %484  ;;  %v783_v26 = vmul.f32 %v1339_v50, %v1734_v62  ;;  %v1341_v54 = vpop.eup %1340 }
 0x36d   : > { %1342 = vrcp.f32 %v485_v36  ;;  %v784_v55 = vmul.f32 %v1341_v54, %v1689_v21  ;;  %v877_v21 = vld [vmem:[%s1862_s3 + $0x8] sm:$0xff] }
 0x36e   : > { %1167 = vmatmul.msk.f32.gmra.mxu0 %vm416_vm2, %v783_v26  ;;  %1344 = vrcp.f32 %v767_v42  ;;  %983 = vmatpush.msrb.mxu1 %v877_v21 }
 0x36f   : > { %1346 = vrcp.f32 %v770_v18 }
 0x370   : > { %984 = vmatpush.msrb.mxu1 %v876_v61 }
 0x373   : > { %v1343_v34 = vpop.eup %1342 }
 0x374   : > { %v503_v33 = vmul.f32 %v1343_v34, %v1738_v27  ;;  %v1345_v57 = vpop.eup %1344 }
 0x375   : > { %v785_v58 = vmul.f32 %v1345_v57, %v1722_v51  ;;  %v1347_v59 = vpop.eup %1346  ;;  %v879_v51 = vld [vmem:[%s1862_s3 + $0x18] sm:$0xff] }
 0x376   : > { %1145 = vmatmul.msk.f32.gmra.mxu2 %vm416_vm2, %v503_v33  ;;  %1168 = vmatmul.msk.f32.gmra.mxu0 %vm416_vm2, %v784_v55  ;;  %v786_v60 = vmul.f32 %v1347_v59, %v1726_v53  ;;  %v878_v53 = vld [vmem:[%s1862_s3 + $0x10] sm:$0xff] }
 0x377   : > { %918 = vmatpush.msrb.mxu2 %v879_v51  ;;  %1194 = vmatpush.msrb.mxu3 %v879_v51 }
 0x379   : > { %919 = vmatpush.msrb.mxu2 %v878_v53  ;;  %1195 = vmatpush.msrb.mxu3 %v878_v53 }
 0x37b   : > { %1196 = vmatpush.msra.mxu3 %v877_v21 }
 0x37d   : > { %1197 = vmatpush.msra.mxu3 %v876_v61 }
 0x37e   : > { %1169 = vmatmul.msk.f32.gmra.mxu0 %vm416_vm2, %v785_v58 }
 0x37f   : > { %v855_v52 = vpop.f32.mrf.mxu0 }
 0x386   : > { %1170 = vmatmul.msk.f32.gmra.mxu0 %vm416_vm2, %v786_v60 }
 0x3ad   : > { %v858_v5 = vpop.f32.mrf.mxu0 }
 0x3b5   : > { %v861_v8 = vpop.f32.mrf.mxu0 }
 0x3bb   : > { %v488_v62 = vpop.xlane.xlu1 %487 }
 0x3bc   : > { %1348 = vrcp.f32 %v488_v62 }
 0x3c2   : > { %v1349_v0 = vpop.eup %1348  ;;  %v570_v27 = vpop.f32.mrf.mxu2 }
 0x3c3   : > { %1179 = vmatmul.msk.f32.vlgmr.msrb.gmra.mxu1 %vm334_vm1, %v570_v27  ;;  %v504_v1 = vmul.f32 %v1349_v0, %v1329_v37 }
 0x3c5   : > { %1146 = vmatmul.msk.f32.gmra.mxu2 %vm416_vm2, %v504_v1 }
 0x3ca   : > { %v573_v48 = vpop.f32.mrf.mxu2 }
 0x3cb   : > { %1180 = vmatmul.msk.f32.gmra.mxu1 %vm334_vm1, %v573_v48 }
 0x3cd   : > { %1171 = vmatmul.msk.f32.vlgmr.msrb.gmra.mxu2 %vm334_vm1, %v852_v2 }
 0x3d2   : > { %v576_v4 = vpop.f32.mrf.mxu2 }
 0x3d3   : > { %1181 = vmatmul.msk.f32.gmra.mxu1 %vm334_vm1, %v576_v4 }
 0x3d5   : > { %1172 = vmatmul.msk.f32.gmra.mxu2 %vm334_vm1, %v855_v52 }
 0x3da   : > { %v579_v6 = vpop.f32.mrf.mxu2 }
 0x3db   : > { %1182 = vmatmul.msk.f32.gmra.mxu1 %vm334_vm1, %v579_v6 }
 0x3dd   : > { %1173 = vmatmul.msk.f32.gmra.mxu2 %vm334_vm1, %v858_v5 }
 0x3e2   : > { %v582_v7 = vpop.f32.mrf.mxu2 }
 0x3e3   : > { %1183 = vmatmul.msk.f32.gmra.mxu1 %vm334_vm1, %v582_v7 }
 0x3e5   : > { %1174 = vmatmul.msk.f32.gmra.mxu2 %vm334_vm1, %v861_v8 }
 0x3ea   : > { %v585_v14 = vpop.f32.mrf.mxu2 }
 0x3eb   : > { %v864_v9 = vpop.f32.mrf.mxu0 }
 0x3ed   : > { %1175 = vmatmul.msk.f32.gmra.mxu2 %vm334_vm1, %v864_v9 }
 0x3f3   : > { %v867_v11 = vpop.f32.mrf.mxu0 }
 0x3f5   : > { %1176 = vmatmul.msk.f32.gmra.mxu2 %vm334_vm1, %v867_v11 }
 0x3f9   : > { %v588_v16 = vpop.f32.mrf.mxu2 }
 0x3fb   : > { %v870_v12 = vpop.f32.mrf.mxu0 }
 0x3fd   : > { %1177 = vmatmul.msk.f32.gmra.mxu2 %vm334_vm1, %v870_v12 }
 0x403   : > { %v873_v13 = vpop.f32.mrf.mxu0 }
 0x404   : > { %1178 = vmatmul.msk.f32.vlgmr.msrb.gmra.mxu3 %vm334_vm1, %v873_v13 }
 0x40c   : > { %1184 = vmatmul.msk.f32.vlgmr.msra.gmra.mxu3 %vm334_vm1, %v585_v14 }
 0x414   : > { %1185 = vmatmul.msk.f32.gmra.mxu3 %vm334_vm1, %v588_v16 }
 0x440   : > { %v986_v3 = vpop.f32.mrf.mxu1 }
 0x448   : > { %v591_v17 = vpop.f32.mrf.mxu2  ;;  %v989_v23 = vpop.f32.mrf.mxu1 }
 0x449   : > { %1186 = vmatmul.msk.f32.gmra.mxu3 %vm334_vm1, %v591_v17 }
 0x450   : > { %v921_v19 = vpop.f32.mrf.mxu2  ;;  %v992_v30 = vpop.f32.mrf.mxu1 }
 0x451   : > { %v987_v22 = vadd.f32 %v986_v3, %v921_v19 }
 0x453   : > { %v1014_v24 = vadd.f32 %v1285_v38, %v987_v22 }
 0x455   : > { %1022 = vst.msk [vmem:[%s1807_s15] sm:$0xff] %vm236_vm0, %v1014_v24 }
 0x458   : > { %v924_v25 = vpop.f32.mrf.mxu2  ;;  %v995_v20 = vpop.f32.mrf.mxu1 }
 0x459   : > { %v990_v28 = vadd.f32 %v989_v23, %v924_v25 }
 0x45b   : > { %v1015_v29 = vadd.f32 %v1285_v38, %v990_v28 }
 0x45d   : > { %1023 = vst.msk [vmem:[%s1807_s15 + $0x8] sm:$0xff] %vm236_vm0, %v1015_v29 }
 0x460   : > { %v927_v31 = vpop.f32.mrf.mxu2  ;;  %v998_v40 = vpop.f32.mrf.mxu1 }
 0x461   : > { %v993_v32 = vadd.f32 %v992_v30, %v927_v31 }
 0x463   : > { %v1016_v10 = vadd.f32 %v1285_v38, %v993_v32 }
 0x465   : > { %1024 = vst.msk [vmem:[%s1807_s15 + $0x10] sm:$0xff] %vm236_vm0, %v1016_v10 }
 0x468   : > { %v930_v35 = vpop.f32.mrf.mxu2 }
 0x469   : > { %v996_v37 = vadd.f32 %v995_v20, %v930_v35 }
 0x46b   : > { %v1017_v39 = vadd.f32 %v1285_v38, %v996_v37 }
 0x46d   : > { %1025 = vst.msk [vmem:[%s1807_s15 + $0x18] sm:$0xff] %vm236_vm0, %v1017_v39 }
 0x470   : > { %v933_v56 = vpop.f32.mrf.mxu2 }
 0x471   : > { %v999_v41 = vadd.f32 %v998_v40, %v933_v56 }
 0x473   : > { %v1018_v43 = vadd.f32 %v1285_v38, %v999_v41 }
 0x475   : > { %1026 = vst.msk [vmem:[%s1807_s15 + $0x20] sm:$0xff] %vm236_vm0, %v1018_v43 }
 0x478   : > { %v936_v63 = vpop.f32.mrf.mxu2 }
 0x480   : > { %v939_v49 = vpop.f32.mrf.mxu2 }
 0x487   : > { %v942_v44 = vpop.f32.mrf.mxu3 }
 0x48f   : > { %v1001_v45 = vpop.f32.mrf.mxu3 }
 0x490   : > { %v1002_v46 = vadd.f32 %v1001_v45, %v936_v63 }
 0x492   : > { %v1019_v47 = vadd.f32 %v1285_v38, %v1002_v46 }
 0x494   : > { %1027 = vst.msk [vmem:[%s1807_s15 + $0x28] sm:$0xff] %vm236_vm0, %v1019_v47 }
 0x497   : > { %v1004_v15 = vpop.f32.mrf.mxu3 }
 0x498   : > { %v1005_v50 = vadd.f32 %v1004_v15, %v939_v49 }
 0x49a   : > { %v1020_v36 = vadd.f32 %v1285_v38, %v1005_v50 }
 0x49c   : > { %1028 = vst.msk [vmem:[%s1807_s15 + $0x30] sm:$0xff] %vm236_vm0, %v1020_v36 }
 0x4cc   : > { %v1007_v26 = vpop.f32.mrf.mxu3 }
 0x4cd   : > { %v1008_v42 = vadd.f32 %v1007_v26, %v942_v44 }
 0x4cf   : > { %v1021_v54 = vadd.f32 %v1285_v38, %v1008_v42 }
 0x4d1   : > { %1029 = vst.msk [vmem:[%s1807_s15 + $0x38] sm:$0xff] %vm236_vm0, %v1021_v54 }
 0x4d2   : > { %1377 = shalt.err (!%p1374_p3)
}
 0x4d3   : > { %s1419_s11 = smov 128   ;;  %s1420_s14 = smov 8  }
 0x4d4   : > { %1198 = dma.vmem_to_hbm [thread:$0]  (%p1489_p5), %s1044_s26, 1024, %s1046_s30, %s1031_s6, %s1419_s11, %s1419_s11, %s1420_s14  }
 0x4d5 PF: > { %p1204_p4 = scmp.ge.s32.totalorder %s1412_s21, 2  ;;  %s1060_s15 = sand.u32 1, %s1400_s18  }
 0x4d6   : > { %s1061_s16 = scalar_lea.sflag [#allocation3], %s1060_s15 }
 0x4d7   : > { %p1201_p7 = pnand %p1204_p4, %p1493_p6 }
 0x4d9   : > { %p1202_p8 = pneg %p1201_p7 }
 0x4db   : > { %1395 = dma.done.wait (%p1202_p8), %s1061_s16, 1024  }
 0x4dc   : > { %1397 = vsyncadd (%p1202_p8), %s1061_s16, 4294966272  ;;  %p15_p9 = scmp.ge.s32.totalorder %s1476_s24, 4   ;;  %s1867_s18 = smov %s1404_s19 }
 0x4dd   : > { %s1868_s19 = smov %s1408_s20  ;;  %s1869_s20 = smov %s1487_s27 }
 0x4de   : > { %s1870_s21 = smov %s1476_s24  ;;  %17 = sbr.rel (!%p15_p9) target bundleno = 3 (0x3), region = 75 }
 0x4e3   :  { %1067 = vsyncpa [#allocation3], 1 }
 0x4e4   :  { %1069 = vsyncpa [#allocation3 + $0x1], 1 }

</bundles_post_ra>
